<compile_context>
chip_gen: v7x
topology: tpu7x:2x2x1
jax: 0.10.0
libtpu: 0.0.40
codegen_flags: <defaults>
</compile_context>

<pallas_src>
import jax
import jax.numpy as jnp
from jax.experimental import pallas as pl
from jax.experimental.pallas import tpu as pltpu

LANE = 128     # vreg lane width
SUBLANE = 8    # f32 sublane count


def _round_up(x, m):
    return (x + m - 1) // m * m


def mlp_kernel(x_ref, w1_ref, b1_ref, w2_ref, b2_ref, o_ref):
    # fc1: (TB, D) @ (D, Hp) + (1, Hp) -- MXU, f32 accumulate
    h = jnp.dot(x_ref[...], w1_ref[...], preferred_element_type=jnp.float32)
    h = h + b1_ref[...]
    # sigmoid(x) == 0.5 * tanh(0.5 * x) + 0.5  -> single EUP op (no VPU divide)
    h = 0.5 * jnp.tanh(0.5 * h) + 0.5
    # fc2: (TB, Hp) @ (Hp, C) + (1, C)
    out = jnp.dot(h.astype(w2_ref.dtype), w2_ref[...],
                  preferred_element_type=jnp.float32)
    out = out + b2_ref[...]
    o_ref[...] = out.astype(o_ref.dtype)


def prepare_params(w1, b1, w2, b2, *, compute_dtype=jnp.float32):
    """One-time weight packing (hoisted out of the per-call hot path).

    Pads the hidden dim to 128 lanes (exact: padded hidden columns produce
    sigmoid(0)=0.5, which multiplies zero rows of w2) and casts weights to
    `compute_dtype`.  The class dim (C) is left at its natural width.
    Biases stay f32 (added to the f32 accumulator).
    """
    D, H = w1.shape
    C = w2.shape[1]
    Hp = _round_up(H, LANE)
    cd = compute_dtype
    w1_p = jnp.zeros((D, Hp), cd).at[:, :H].set(w1.astype(cd))
    b1_p = jnp.zeros((1, Hp), jnp.float32).at[:, :H].set(
        b1.astype(jnp.float32).reshape(1, H))
    w2_p = jnp.zeros((Hp, C), cd).at[:H, :].set(w2.astype(cd))
    b2_p = b2.astype(jnp.float32).reshape(1, C)
    return w1_p, b1_p, w2_p, b2_p


def net_forward(x, params, *, block_batch=1024):
    """fc1 -> sigmoid -> fc2 forward pass as a single batch-tiled Pallas kernel.

    x      : (B, input_size) float32 (or bf16 if produced upstream in bf16;
             do NOT cast here -- that would add its own HBM pass)
    params : output of prepare_params(w1, b1, w2, b2)
    returns: (B, num_classes) float32
    """
    w1_p, b1_p, w2_p, b2_p = params
    B, D = x.shape
    assert w1_p.shape[0] == D
    Hp = w1_p.shape[1]
    C = w2_p.shape[1]

    # Batch tile: multiple of 8 sublanes, capped at block_batch, and also at
    # ceil(B/2) so the grid has >= 2 steps whenever B allows it (v7x: both TCs
    # get work via the "parallel" batch axis).
    TB = min(_round_up(block_batch, SUBLANE),
             _round_up(pl.cdiv(B, 2), SUBLANE),
             _round_up(B, SUBLANE))
    TB = max(TB, SUBLANE)
    grid = (pl.cdiv(B, TB),)

    bpe = jnp.dtype(jnp.float32).itemsize
    cost = pl.CostEstimate(
        flops=2 * B * (D * Hp + Hp * C),
        transcendentals=B * Hp,
        bytes_accessed=(B * D + B * C) * bpe
        + w1_p.nbytes + b1_p.nbytes + w2_p.nbytes + b2_p.nbytes,
    )

    return pl.pallas_call(
        mlp_kernel,
        out_shape=jax.ShapeDtypeStruct((B, C), jnp.float32),
        grid=grid,
        in_specs=[
            pl.BlockSpec((TB, D), lambda i: (i, 0)),    # x: streamed, natural width
            pl.BlockSpec((D, Hp), lambda i: (0, 0)),    # w1: VMEM-resident
            pl.BlockSpec((1, Hp), lambda i: (0, 0)),    # b1: VMEM-resident
            pl.BlockSpec((Hp, C), lambda i: (0, 0)),    # w2: VMEM-resident
            pl.BlockSpec((1, C), lambda i: (0, 0)),     # b2: VMEM-resident
        ],
        out_specs=pl.BlockSpec((TB, C), lambda i: (i, 0)),  # natural-width writeback
        compiler_params=pltpu.CompilerParams(
            dimension_semantics=("parallel",),          # shard batch tiles over TCs
        ),
        cost_estimate=cost,
    )(x, w1_p, b1_p, w2_p, b2_p)


def init_params(key, input_size, hidden_size, num_classes):
    """Deterministic PyTorch-style Linear init: U(-1/sqrt(fan_in), 1/sqrt(fan_in))."""
    k1, k2, k3, k4 = jax.random.split(key, 4)
    bound1 = 1.0 / jnp.sqrt(jnp.float32(input_size))
    bound2 = 1.0 / jnp.sqrt(jnp.float32(hidden_size))
    w1 = jax.random.uniform(k1, (input_size, hidden_size), jnp.float32, -bound1, bound1)
    b1 = jax.random.uniform(k2, (1, hidden_size), jnp.float32, -bound1, bound1)
    w2 = jax.random.uniform(k3, (hidden_size, num_classes), jnp.float32, -bound2, bound2)
    b2 = jax.random.uniform(k4, (1, num_classes), jnp.float32, -bound2, bound2)
    return w1, b1, w2, b2


def _reference(x, w1, b1, w2, b2):
    return jax.nn.sigmoid(x @ w1 + b1) @ w2 + b2


if __name__ == "__main__":
    input_size = 30
    hidden_size = 32
    num_classes = 2

    key = jax.random.PRNGKey(0)
    k_x, k_x2, k_p = jax.random.split(key, 3)
    w1, b1, w2, b2 = init_params(k_p, input_size, hidden_size, num_classes)

    # One-time weight packing (pads hidden dim to 128 lanes, keeps C natural).
    params = prepare_params(w1, b1, w2, b2)

    # Small demo batch (single grid step).
    batch = 8
    x = jax.random.normal(k_x, (batch, input_size), jnp.float32)
    out = jax.block_until_ready(net_forward(x, params))
    ref = _reference(x, w1, b1, w2, b2)
    assert out.shape == (batch, num_classes)
    assert jnp.allclose(out, ref, atol=1e-4, rtol=1e-4)

    # Larger, non-multiple batch: 3 tiles of 256 rows, last tile partial
    # (exercises the cdiv grid with masked trailing block, no batch padding).
    batch2 = 600
    x2 = jax.random.normal(k_x2, (batch2, input_size), jnp.float32)
    out2 = jax.block_until_ready(net_forward(x2, params, block_batch=256))
    ref2 = _reference(x2, w1, b1, w2, b2)
    assert out2.shape == (batch2, num_classes)
    assert jnp.allclose(out2, ref2, atol=1e-4, rtol=1e-4)

    print("KERNEL_OK")
</pallas_src>

<mosaic_0001>
module attributes {stable_mosaic.version = 11 : i64} {
  func.func @mlp_kernel(%arg0: i32, %arg1: memref<8x30xf32, #tpu.memory_space<vmem>>, %arg2: memref<30x128xf32, #tpu.memory_space<vmem>>, %arg3: memref<1x128xf32, #tpu.memory_space<vmem>>, %arg4: memref<128x2xf32, #tpu.memory_space<vmem>>, %arg5: memref<1x2xf32, #tpu.memory_space<vmem>>, %arg6: memref<8x2xf32, #tpu.memory_space<vmem>>) attributes {dimension_semantics = [#tpu.dimension_semantics<parallel>], iteration_bounds = array<i64: 1>, scalar_prefetch = 0 : i64, scratch_operands = 0 : i64, tpu.core_type = #tpu.core_type<tc>, window_params = [{transform_indices = @transform_0, window_bounds = array<i64: 8, 30>}, {pipeline_mode = #tpu.pipeline_mode<synchronous>, transform_indices = @transform_1, window_bounds = array<i64: 30, 128>}, {pipeline_mode = #tpu.pipeline_mode<synchronous>, transform_indices = @transform_2, window_bounds = array<i64: 1, 128>}, {pipeline_mode = #tpu.pipeline_mode<synchronous>, transform_indices = @transform_3, window_bounds = array<i64: 128, 2>}, {pipeline_mode = #tpu.pipeline_mode<synchronous>, transform_indices = @transform_4, window_bounds = array<i64: 1, 2>}, {transform_indices = @transform_5, window_bounds = array<i64: 8, 2>}]} {
    %c0 = arith.constant 0 : index
    %c0_0 = arith.constant 0 : index
    %0 = vector.load %arg1[%c0, %c0_0] : memref<8x30xf32, #tpu.memory_space<vmem>>, vector<8x30xf32>
    %c0_1 = arith.constant 0 : index
    %c0_2 = arith.constant 0 : index
    %1 = vector.load %arg2[%c0_1, %c0_2] : memref<30x128xf32, #tpu.memory_space<vmem>>, vector<30x128xf32>
    %cst = arith.constant dense<0.000000e+00> : vector<8x128xf32>
    %2 = tpu.matmul %0, %1, %cst {dimension_numbers = #tpu.dot_dimension_numbers<[1], [0], [0], [1], [0, 0, 1, 1], [], []>} : vector<8x30xf32>, vector<30x128xf32>, vector<8x128xf32> -> vector<8x128xf32>
    %c0_3 = arith.constant 0 : index
    %c0_4 = arith.constant 0 : index
    %3 = vector.load %arg3[%c0_3, %c0_4] : memref<1x128xf32, #tpu.memory_space<vmem>>, vector<1x128xf32>
    %4 = vector.broadcast %3 : vector<1x128xf32> to vector<8x128xf32>
    %5 = arith.addf %2, %4 : vector<8x128xf32>
    %cst_5 = arith.constant 5.000000e-01 : f32
    %6 = vector.broadcast %cst_5 : f32 to vector<8x128xf32>
    %7 = arith.mulf %6, %5 : vector<8x128xf32>
    %8 = math.tanh %7 : vector<8x128xf32>
    %cst_6 = arith.constant 5.000000e-01 : f32
    %9 = vector.broadcast %cst_6 : f32 to vector<8x128xf32>
    %10 = arith.mulf %9, %8 : vector<8x128xf32>
    %cst_7 = arith.constant 5.000000e-01 : f32
    %11 = vector.broadcast %cst_7 : f32 to vector<8x128xf32>
    %12 = arith.addf %10, %11 : vector<8x128xf32>
    %c0_8 = arith.constant 0 : index
    %c0_9 = arith.constant 0 : index
    %13 = vector.load %arg4[%c0_8, %c0_9] : memref<128x2xf32, #tpu.memory_space<vmem>>, vector<128x2xf32>
    %cst_10 = arith.constant dense<0.000000e+00> : vector<8x2xf32>
    %14 = tpu.matmul %12, %13, %cst_10 {dimension_numbers = #tpu.dot_dimension_numbers<[1], [0], [0], [1], [0, 0, 1, 1], [], []>} : vector<8x128xf32>, vector<128x2xf32>, vector<8x2xf32> -> vector<8x2xf32>
    %c0_11 = arith.constant 0 : index
    %c0_12 = arith.constant 0 : index
    %15 = vector.load %arg5[%c0_11, %c0_12] : memref<1x2xf32, #tpu.memory_space<vmem>>, vector<1x2xf32>
    %16 = vector.broadcast %15 : vector<1x2xf32> to vector<8x2xf32>
    %17 = arith.addf %14, %16 : vector<8x2xf32>
    %c0_13 = arith.constant 0 : index
    %c0_14 = arith.constant 0 : index
    %18 = vector.load %arg6[%c0_13, %c0_14] : memref<8x2xf32, #tpu.memory_space<vmem>>, vector<8x2xf32>
    tpu.vector_store %arg6[%c0_13, %c0_14], %17 {strides = array<i32>} : memref<8x2xf32, #tpu.memory_space<vmem>>, vector<8x2xf32>,
    return
  }
  func.func @transform_0(%arg0: i32) -> (i32, i32) {
    %c0_i32 = arith.constant 0 : i32
    %c0_i32_0 = arith.constant 0 : i32
    return %arg0, %c0_i32 : i32, i32
  }
  func.func @transform_1(%arg0: i32) -> (i32, i32) {
    %c0_i32 = arith.constant 0 : i32
    %c0_i32_0 = arith.constant 0 : i32
    %c0_i32_1 = arith.constant 0 : i32
    return %c0_i32, %c0_i32_0 : i32, i32
  }
  func.func @transform_2(%arg0: i32) -> (i32, i32) {
    %c0_i32 = arith.constant 0 : i32
    %c0_i32_0 = arith.constant 0 : i32
    %c0_i32_1 = arith.constant 0 : i32
    return %c0_i32, %c0_i32_0 : i32, i32
  }
  func.func @transform_3(%arg0: i32) -> (i32, i32) {
    %c0_i32 = arith.constant 0 : i32
    %c0_i32_0 = arith.constant 0 : i32
    %c0_i32_1 = arith.constant 0 : i32
    return %c0_i32, %c0_i32_0 : i32, i32
  }
  func.func @transform_4(%arg0: i32) -> (i32, i32) {
    %c0_i32 = arith.constant 0 : i32
    %c0_i32_0 = arith.constant 0 : i32
    %c0_i32_1 = arith.constant 0 : i32
    return %c0_i32, %c0_i32_0 : i32, i32
  }
  func.func @transform_5(%arg0: i32) -> (i32, i32) {
    %c0_i32 = arith.constant 0 : i32
    %c0_i32_0 = arith.constant 0 : i32
    return %arg0, %c0_i32 : i32, i32
  }
}

</mosaic_0001>

<bundles_post_ra>
// kernel: tpu_custom_call.1
= control target key start
LH: loop header
LB: loop body
LE: loop exit
PB: predicated region body
PF: predicated region fallthrough
CT: control target
= control target key end

     0   :  { %v322_v0 = vmov 0.0|0.0   ;;  %vm36_vm0 = vcmask 1045504   ;;  %vm323_vm1 = vmmov 0   ;;  %v324_v6 = vmov 0.0   ;;  %s428_s1 = inlined_call_operand.vmem [shape: f32[30,128], index: 1, kind: input, shape index: {}]   ;;  %s429_s3 = inlined_call_operand.vmem [shape: f32[128,2], index: 3, kind: input, shape index: {}]   ;;  %s430_s0 = inlined_call_operand.vmem [shape: f32[8,30], index: 0, kind: input, shape index: {}]   ;;  %s431_s2 = inlined_call_operand.vmem [shape: f32[1,128], index: 2, kind: input, shape index: {}]   ;;  %s432_s4 = inlined_call_operand.vmem [shape: f32[1,2], index: 4, kind: input, shape index: {}]   ;;  %s433_s5 = inlined_call_operand.vmem [shape: f32[8,2], index: 5, kind: output, shape index: {}]  }
   0x1   :  { %285 = vmatprep.subr.bf16.mxu0 %v322_v0  ;;  %v21_v1 = vld [vmem:[%s428_s1] sm:$0xff]  ;;  %v22_v2 = vld [vmem:[%s428_s1 + $0x8] sm:$0xff]  ;;  %v23_v3 = vld [vmem:[%s428_s1 + $0x10] sm:$0xff]  ;;  %292 = vmatprep.subr.bf16.mxu1 %v322_v0  ;;  %vm325_vm2 = vmmov 1   ;;  %vm32_vm4 = vcmask 244736   ;;  %vm207_vm5 = vcmask 15360  }
   0x2   :  { %v286_v4 = vpack.c.bf16 %v22_v2, %v21_v1  ;;  %v24_v5 = vld [vmem:[%s428_s1 + $0x18] sm:$0x3f]  ;;  %247 = vmatprep.mubr.msk.f32.mxu0 %vm323_vm1, %v324_v6  ;;  %282 = vmatprep.mubr.msk.f32.mxu1 %vm323_vm1, %v324_v6  ;;  %v114_v7 = vld [vmem:[%s429_s3] sm:$0xff]  ;;  %v115_v8 = vld [vmem:[%s429_s3 + $0x8] sm:$0xff] }
   0x3   :  { %v116_v9 = vld [vmem:[%s429_s3 + $0x10] sm:$0xff]  ;;  %v289_v10 = vpack.c.bf16 %v24_v5, %v23_v3  ;;  %v293_v11 = vpack.c.bf16 %v115_v8, %v114_v7  ;;  %v117_v12 = vld [vmem:[%s429_s3 + $0x18] sm:$0xff]  ;;  %vm290_vm3 = vmpackc.low %vm36_vm0, %vm325_vm2 }
   0x4   :  { %287 = vmatpush3.bf16.msra.mxu0 %v286_v4  ;;  %v296_v13 = vpack.c.bf16 %v117_v12, %v116_v9  ;;  %v118_v14 = vld [vmem:[%s429_s3 + $0x20] sm:$0xff]  ;;  %v119_v15 = vld [vmem:[%s429_s3 + $0x28] sm:$0xff]  ;;  %v120_v18 = vld [vmem:[%s429_s3 + $0x30] sm:$0xff] }
   0x5   :  { %288 = vmatprep.subr.bf16.mxu0 %v322_v0  ;;  %294 = vmatpush3.bf16.msra.mxu1 %v293_v11  ;;  %v20_v16 = vld [vmem:[%s430_s0] sm:$0xff]  ;;  %v299_v17 = vpack.c.bf16 %v119_v15, %v118_v14  ;;  %v121_v19 = vld [vmem:[%s429_s3 + $0x38] sm:$0xff]  ;;  %v123_v22 = vld [vmem:[%s429_s3 + $0x48] sm:$0xff] }
   0x6   :  { %295 = vmatprep.subr.bf16.mxu1 %v322_v0  ;;  %v302_v20 = vpack.c.bf16 %v121_v19, %v120_v18  ;;  %v122_v21 = vld [vmem:[%s429_s3 + $0x40] sm:$0xff]  ;;  %v124_v24 = vld [vmem:[%s429_s3 + $0x50] sm:$0xff]  ;;  %v125_v25 = vld [vmem:[%s429_s3 + $0x58] sm:$0xff] }
   0x7   :  { %v305_v23 = vpack.c.bf16 %v123_v22, %v122_v21  ;;  %v308_v26 = vpack.c.bf16 %v125_v25, %v124_v24  ;;  %v126_v27 = vld [vmem:[%s429_s3 + $0x60] sm:$0xff]  ;;  %v127_v28 = vld [vmem:[%s429_s3 + $0x68] sm:$0xff]  ;;  %v128_v30 = vld [vmem:[%s429_s3 + $0x70] sm:$0xff] }
   0x8   :  { %291 = vmatpush3.bf16.msk.msra.mxu0 %vm290_vm3, %v289_v10  ;;  %v311_v29 = vpack.c.bf16 %v127_v28, %v126_v27  ;;  %v129_v31 = vld [vmem:[%s429_s3 + $0x78] sm:$0xff]  ;;  %v213_v33 = vld [vmem:[%s431_s2] ss:$0 sm:$0xff] }
   0x9   :  { %297 = vmatpush3.bf16.msra.mxu1 %v296_v13  ;;  %v314_v32 = vpack.c.bf16 %v129_v31, %v128_v30  ;;  %v216_v41 = vld [vmem:[%s432_s4] ss:$0 sm:$0xff] }
   0xa   :  { %298 = vmatprep.subr.bf16.mxu1 %v322_v0 }
   0xb   :  { %248 = vmatmul.mubr.msk.f32.vlgmr.msra.gmra.mrb[0].mxu0 %vm32_vm4, %v20_v16 }
   0xd   :  { %300 = vmatpush3.bf16.msra.mxu1 %v299_v17 }
   0xe   :  { %301 = vmatprep.subr.bf16.mxu1 %v322_v0 }
  0x11   :  { %303 = vmatpush3.bf16.msra.mxu1 %v302_v20 }
  0x12   :  { %304 = vmatprep.subr.bf16.mxu1 %v322_v0 }
  0x15   :  { %306 = vmatpush3.bf16.msra.mxu1 %v305_v23 }
  0x16   :  { %307 = vmatprep.subr.bf16.mxu1 %v322_v0 }
  0x19   :  { %309 = vmatpush3.bf16.msra.mxu1 %v308_v26 }
  0x1a   :  { %310 = vmatprep.subr.bf16.mxu1 %v322_v0 }
  0x1d   :  { %312 = vmatpush3.bf16.msra.mxu1 %v311_v29 }
  0x1e   :  { %313 = vmatprep.subr.bf16.mxu1 %v322_v0 }
  0x21   :  { %315 = vmatpush3.bf16.msra.mxu1 %v314_v32 }
  0xde   :  { %v106_v34 = vpop.f32.mrb[0].mxu0 }
  0xdf   :  { %v107_v35 = vadd.f32 %v213_v33, %v106_v34  ;;  %v249_v36 = vpop.f32.mrb[1].mxu0 }
  0xe1   :  { %v110_v37 = vmul.f32 0.5, %v107_v35 }
  0xe3   :  { %320 = vtanh.f32 %v110_v37 }
  0xed   :  { %v321_v38 = vpop.eup %320 }
  0xee   :  { %v112_v39 = vmul.f32 0.5, %v321_v38 }
  0xf0   :  { %v113_v40 = vadd.f32 0.5, %v112_v39 }
  0xf2   :  { %283 = vmatmul.mubr.f32.vlgmr.msra.gmra.mrb[0].mxu1 %v113_v40 }
 0x1c5   :  { %v203_v42 = vpop.f32.mrb[0].mxu1 }
 0x1c6   :  { %v204_v43 = vadd.f32 %v216_v41, %v203_v42  ;;  %v284_v44 = vpop.f32.mrb[1].mxu1 }
 0x1c8   :  { %208 = vst.msk [vmem:[%s433_s5] sm:$0xff] %vm207_vm5, %v204_v43 }

</bundles_post_ra>
